<compile_context>
chip_gen: v7x
topology: tpu7x:2x2x1
jax: 0.10.0
libtpu: 0.0.40
codegen_flags: <defaults>
</compile_context>

<pallas_src>
import jax
import jax.numpy as jnp
from jax.experimental import pallas as pl
from jax.experimental.pallas import tpu as pltpu

BN_EPS = 1e-5


# --------------------------------------------------------------------------
# Helpers
# --------------------------------------------------------------------------
def _round_up(x, m):
    return (x + m - 1) // m * m


def _pick_tile(d):
    # Prefer wide tiles: v6e/v7x MXUs are 2x256x256 -- a 128-wide output tile
    # only half-fills the systolic-array N dimension.  v5e (4x128x128) is fine
    # with any of these.
    for t in (512, 256, 128):
        if d % t == 0:
            return t
    return d


def _pad2(a, shape, fill=0.0):
    pads = [(0, s - d) for d, s in zip(a.shape, shape)]
    return jnp.pad(a, pads, constant_values=fill)


def _vmem_capacity_bytes():
    try:
        return int(pltpu.get_tpu_info().vmem_capacity_bytes)
    except Exception:
        return 64 << 20          # conservative default (v7x-sized VMEM)


def _bn_train(h, gamma, beta):
    """PyTorch BatchNorm1d training-mode forward (biased variance).

    Two-pass (subtract-mean) variance: avoids the E[x^2]-E[x]^2 cancellation
    flagged in review; costs one extra VPU pass over a VMEM-resident tile.
    h: [N, T] f32 (full batch resident). gamma/beta: [1, T] f32.
    """
    inv_n = 1.0 / h.shape[0]
    mean = jnp.sum(h, axis=0, keepdims=True) * inv_n
    d = h - mean
    var = jnp.sum(d * d, axis=0, keepdims=True) * inv_n
    inv = jax.lax.rsqrt(var + BN_EPS)            # EUP slot, effectively free
    return d * (inv * gamma) + beta              # scale folded on the (1,T) row


# --------------------------------------------------------------------------
# Fused single-call kernels: grid = (phase, j); phase 0 = dense1(+downsample),
# phase 1 = dense2 + bn2 + residual + relu.  out1 / ident live in VMEM scratch.
# --------------------------------------------------------------------------
def fused_ds_kernel(x_ref, wcat_ref, g1_ref, be1_ref, bd_ref,
                    w2_ref, g2_ref, be2_ref, o_ref, out1_sc, id_sc):
    p = pl.program_id(0)
    tn = o_ref.shape[-1]
    off = pl.multiple_of(pl.program_id(1) * tn, tn)

    @pl.when(p == 0)
    def _dense1():
        # One MXU pass computes both x@W1_tile and x@Wd_tile (shared LHS).
        y = jnp.dot(x_ref[...], wcat_ref[...], preferred_element_type=jnp.float32)
        h = _bn_train(y[:, :tn], g1_ref[...], be1_ref[...])   # b1 dropped (BN no-op)
        out1_sc[:, pl.ds(off, tn)] = jnp.maximum(h, 0.0).astype(out1_sc.dtype)
        id_sc[:, pl.ds(off, tn)] = (y[:, tn:] + bd_ref[...]).astype(id_sc.dtype)

    @pl.when(p == 1)
    def _dense2():
        acc = jnp.dot(out1_sc[...], w2_ref[...], preferred_element_type=jnp.float32)
        y = _bn_train(acc, g2_ref[...], be2_ref[...])          # b2 dropped (BN no-op)
        y = y + id_sc[:, pl.ds(off, tn)].astype(jnp.float32)
        o_ref[...] = jnp.maximum(y, 0.0).astype(o_ref.dtype)


def fused_id_kernel(x_ref, w1_ref, g1_ref, be1_ref,
                    w2_ref, g2_ref, be2_ref, o_ref, out1_sc):
    p = pl.program_id(0)
    tn = o_ref.shape[-1]
    off = pl.multiple_of(pl.program_id(1) * tn, tn)

    @pl.when(p == 0)
    def _dense1():
        h = jnp.dot(x_ref[...], w1_ref[...], preferred_element_type=jnp.float32)
        h = _bn_train(h, g1_ref[...], be1_ref[...])
        out1_sc[:, pl.ds(off, tn)] = jnp.maximum(h, 0.0).astype(out1_sc.dtype)

    @pl.when(p == 1)
    def _dense2():
        acc = jnp.dot(out1_sc[...], w2_ref[...], preferred_element_type=jnp.float32)
        y = _bn_train(acc, g2_ref[...], be2_ref[...])
        y = y + x_ref[:, pl.ds(off, tn)].astype(jnp.float32)   # identity residual
        o_ref[...] = jnp.maximum(y, 0.0).astype(o_ref.dtype)


# --------------------------------------------------------------------------
# Two-stage fallback (out1 / ident round-trip HBM) for shapes whose fused
# scratch does not fit VMEM.
# --------------------------------------------------------------------------
def stage1_ds_kernel(x_ref, wcat_ref, g1_ref, be1_ref, bd_ref, out1_ref, id_ref):
    tn = out1_ref.shape[-1]
    y = jnp.dot(x_ref[...], wcat_ref[...], preferred_element_type=jnp.float32)
    h = _bn_train(y[:, :tn], g1_ref[...], be1_ref[...])
    out1_ref[...] = jnp.maximum(h, 0.0).astype(out1_ref.dtype)
    id_ref[...] = (y[:, tn:] + bd_ref[...]).astype(id_ref.dtype)


def stage1_kernel(x_ref, w1_ref, g1_ref, be1_ref, out1_ref):
    h = jnp.dot(x_ref[...], w1_ref[...], preferred_element_type=jnp.float32)
    h = _bn_train(h, g1_ref[...], be1_ref[...])
    out1_ref[...] = jnp.maximum(h, 0.0).astype(out1_ref.dtype)


def stage2_kernel(h_ref, w2_ref, g2_ref, be2_ref, id_ref, o_ref):
    # Output block index is constant across k -> o_ref is the accumulator
    # (no separate VMEM scratch; review feedback).
    k = pl.program_id(1)

    @pl.when(k == 0)
    def _init():
        o_ref[...] = jnp.zeros_like(o_ref)

    o_ref[...] += jnp.dot(h_ref[...], w2_ref[...], preferred_element_type=jnp.float32)

    @pl.when(k == pl.num_programs(1) - 1)
    def _finalize():
        y = _bn_train(o_ref[...], g2_ref[...], be2_ref[...])
        o_ref[...] = jnp.maximum(y + id_ref[...].astype(jnp.float32), 0.0)


# --------------------------------------------------------------------------
# Wrapper
# --------------------------------------------------------------------------
def resnet_block(x, params, *, tile_n=None, tile_k=None, force_two_stage=False):
    """x: [N, in_feature] f32. params: dict from init_params(). Returns f32."""
    n, in_f = x.shape
    out_f = params["w1"].shape[1]
    has_ds = "wd" in params
    if not has_ds and in_f != out_f:
        raise ValueError("no-downsample path requires in_feature == out_feature")

    in_f_p = _round_up(in_f, 128)
    out_f_p = _round_up(out_f, 128)

    vmem_cap = _vmem_capacity_bytes()
    # ~96 MiB usable on 128 MiB chips (v5e/v6e), ~48 MiB on 64 MiB chips (v7x).
    vmem_budget = (vmem_cap // 4) * 3

    user_tile_n = tile_n is not None
    tile_n = tile_n if user_tile_n else _pick_tile(out_f_p)
    assert out_f_p % tile_n == 0, "tile_n must divide padded out_feature"
    nt = out_f_p // tile_n
    w1_cols = 2 * tile_n if has_ds else tile_n

    # ---- fused-path VMEM estimate (bytes) ----
    x_bytes = n * in_f_p * 2                       # x, bf16 (constant block)
    fused_bytes = (2 * x_bytes                     # double-buffer allocation
                   + 2 * in_f_p * w1_cols * 2      # W1 / [W1|Wd] tile
                   + 2 * out_f_p * tile_n * 2      # w2 strip
                   + 2 * n * tile_n * 4            # f32 output tile
                   + n * out_f_p * 2               # out1 scratch (bf16)
                   + (n * out_f_p * 2 if has_ds else 0)   # ident scratch (bf16)
                   + 2 * n * w1_cols * 4           # phase-0 f32 temporaries
                   + 2 * n * tile_n * 4            # phase-1 f32 temporaries
                   + 16 * tile_n * 4)              # per-tile BN vectors
    use_fused = (not force_two_stage) and fused_bytes <= vmem_budget

    if not use_fused:
        if not user_tile_n and nt == 1 and tile_n >= 256 and vmem_cap <= (64 << 20):
            # v7x heuristic (64 MiB VMEM <=> 2 TensorCores/chip): keep the
            # 'parallel' feature-tile axis >= 2 steps so both cores get work.
            tile_n //= 2
        nt = out_f_p // tile_n
        w1_cols = 2 * tile_n if has_ds else tile_n
        min_bytes = (2 * x_bytes + 2 * in_f_p * w1_cols * 2
                     + 4 * n * tile_n * 4 + 2 * n * w1_cols * 4)
        if min_bytes > vmem_budget:
            # TODO(synk): batch-tile BN as a two-pass sum / sum-of-squares
            # reduction over a batch grid axis; naive batch tiling would
            # silently compute per-tile statistics.
            raise NotImplementedError(
                f"batch={n} does not fit VMEM-resident BatchNorm "
                f"({min_bytes} B > {vmem_budget} B budget)")

    # ---- padded / pre-cast operands (inert extra lanes: zero weights,
    #      gamma=1, beta=0).  Batch axis NOT padded (would corrupt BN stats).
    #      x is cast to bf16 ONCE here (review: no per-step in-kernel cast). ----
    x_bf = _pad2(x.astype(jnp.float32), (n, in_f_p)).astype(jnp.bfloat16)
    w1_p = _pad2(params["w1"], (in_f_p, out_f_p)).astype(jnp.bfloat16)
    g1_p = _pad2(params["g1"], (1, out_f_p), fill=1.0)
    be1_p = _pad2(params["be1"], (1, out_f_p))
    w2_p = _pad2(params["w2"], (out_f_p, out_f_p)).astype(jnp.bfloat16)
    g2_p = _pad2(params["g2"], (1, out_f_p), fill=1.0)
    be2_p = _pad2(params["be2"], (1, out_f_p))
    if has_ds:
        wd_p = _pad2(params["wd"], (in_f_p, out_f_p)).astype(jnp.bfloat16)
        bd_p = _pad2(params["bd"], (1, out_f_p))
        # Interleave W1/Wd tiles along lanes: grid step j sees the contiguous
        # block [W1_tile_j | Wd_tile_j] of width 2*tile_n (shared-LHS MXU pass).
        w1r = w1_p.reshape(in_f_p, nt, tile_n)
        wdr = wd_p.reshape(in_f_p, nt, tile_n)
        wcat = jnp.concatenate([w1r, wdr], axis=2).reshape(in_f_p, nt * 2 * tile_n)

    flops1 = 2 * n * in_f_p * out_f_p * (2 if has_ds else 1) + 20 * n * out_f_p
    flops2 = 2 * n * out_f_p * out_f_p + 20 * n * out_f_p

    # ------------------------------ fused path ------------------------------
    if use_fused:
        last = nt - 1
        # Phase-dependent index maps: phase 0 walks the stage-1 operands over
        # j, phase 1 walks the stage-2 operands; the idle phase parks on a
        # block chosen to avoid redundant refetches at the phase boundary.
        s1_map = lambda p, j: (0, j * (1 - p) + last * p)
        s2_map = lambda p, j: (0, j * p)
        x_map = lambda p, j: (0, 0)      # constant block: fetched once

        cost = pl.CostEstimate(
            flops=flops1 + flops2,
            transcendentals=2 * out_f_p,
            bytes_accessed=(x_bytes + in_f_p * w1_cols * nt * 2
                            + out_f_p * out_f_p * 2 + n * out_f_p * 4
                            + 24 * out_f_p))

        if has_ds:
            kernel = fused_ds_kernel
            in_specs = [
                pl.BlockSpec((n, in_f_p), x_map),
                pl.BlockSpec((in_f_p, 2 * tile_n), s1_map),
                pl.BlockSpec((1, tile_n), s1_map),
                pl.BlockSpec((1, tile_n), s1_map),
                pl.BlockSpec((1, tile_n), s1_map),
                pl.BlockSpec((out_f_p, tile_n), s2_map),
                pl.BlockSpec((1, tile_n), s2_map),
                pl.BlockSpec((1, tile_n), s2_map),
            ]
            args = (x_bf, wcat, g1_p, be1_p, bd_p, w2_p, g2_p, be2_p)
            scratch = [pltpu.VMEM((n, out_f_p), jnp.bfloat16),   # out1
                       pltpu.VMEM((n, out_f_p), jnp.bfloat16)]   # ident
        else:
            kernel = fused_id_kernel
            in_specs = [
                pl.BlockSpec((n, in_f_p), x_map),
                pl.BlockSpec((in_f_p, tile_n), s1_map),
                pl.BlockSpec((1, tile_n), s1_map),
                pl.BlockSpec((1, tile_n), s1_map),
                pl.BlockSpec((out_f_p, tile_n), s2_map),
                pl.BlockSpec((1, tile_n), s2_map),
                pl.BlockSpec((1, tile_n), s2_map),
            ]
            args = (x_bf, w1_p, g1_p, be1_p, w2_p, g2_p, be2_p)
            scratch = [pltpu.VMEM((n, out_f_p), jnp.bfloat16)]   # out1

        out_p = pl.pallas_call(
            kernel,
            out_shape=jax.ShapeDtypeStruct((n, out_f_p), jnp.float32),
            grid=(2, nt),
            in_specs=in_specs,
            out_specs=pl.BlockSpec((n, tile_n), s2_map),
            scratch_shapes=scratch,
            compiler_params=pltpu.CompilerParams(
                # phase->tile dependency flows through VMEM scratch: both axes
                # must stay sequential on one core.
                dimension_semantics=("arbitrary", "arbitrary"),
                vmem_limit_bytes=vmem_budget),
            cost_estimate=cost,
        )(*args)
        return out_p[:, :out_f].astype(x.dtype)

    # ---------------------------- two-stage path ----------------------------
    if tile_k is None:
        # Prefer nk == 1 (out1 fetched once, kept resident) whenever it fits.
        resident_full_k = (2 * n * out_f_p * 2
                           + 2 * out_f_p * tile_n * 2
                           + 2 * n * tile_n * 4 + 2 * n * tile_n * 2)
        tile_k = out_f_p if resident_full_k <= vmem_budget else _pick_tile(out_f_p)
    assert out_f_p % tile_k == 0, "tile_k must divide padded out_feature"
    nk = out_f_p // tile_k

    cparams_1d = pltpu.CompilerParams(
        dimension_semantics=("parallel",), vmem_limit_bytes=vmem_budget)
    cparams_2d = pltpu.CompilerParams(
        dimension_semantics=("parallel", "arbitrary"), vmem_limit_bytes=vmem_budget)

    cost1 = pl.CostEstimate(
        flops=flops1, transcendentals=out_f_p,
        bytes_accessed=(x_bytes + in_f_p * w1_cols * nt * 2
                        + n * out_f_p * (4 if has_ds else 2) + 16 * out_f_p))
    cost2 = pl.CostEstimate(
        flops=flops2, transcendentals=out_f_p,
        bytes_accessed=(n * out_f_p * 2 * (nt if nk > 1 else 1)
                        + out_f_p * out_f_p * 2 + n * out_f_p * 2
                        + n * out_f_p * 4 + 16 * out_f_p))

    if has_ds:
        out1, ident = pl.pallas_call(
            stage1_ds_kernel,
            out_shape=(jax.ShapeDtypeStruct((n, out_f_p), jnp.bfloat16),
                       jax.ShapeDtypeStruct((n, out_f_p), jnp.bfloat16)),
            grid=(nt,),
            in_specs=[pl.BlockSpec((n, in_f_p), lambda j: (0, 0)),
                      pl.BlockSpec((in_f_p, 2 * tile_n), lambda j: (0, j)),
                      pl.BlockSpec((1, tile_n), lambda j: (0, j)),
                      pl.BlockSpec((1, tile_n), lambda j: (0, j)),
                      pl.BlockSpec((1, tile_n), lambda j: (0, j))],
            out_specs=(pl.BlockSpec((n, tile_n), lambda j: (0, j)),
                       pl.BlockSpec((n, tile_n), lambda j: (0, j))),
            compiler_params=cparams_1d,
            cost_estimate=cost1,
        )(x_bf, wcat, g1_p, be1_p, bd_p)
    else:
        out1 = pl.pallas_call(
            stage1_kernel,
            out_shape=jax.ShapeDtypeStruct((n, out_f_p), jnp.bfloat16),
            grid=(nt,),
            in_specs=[pl.BlockSpec((n, in_f_p), lambda j: (0, 0)),
                      pl.BlockSpec((in_f_p, tile_n), lambda j: (0, j)),
                      pl.BlockSpec((1, tile_n), lambda j: (0, j)),
                      pl.BlockSpec((1, tile_n), lambda j: (0, j))],
            out_specs=pl.BlockSpec((n, tile_n), lambda j: (0, j)),
            compiler_params=cparams_1d,
            cost_estimate=cost1,
        )(x_bf, w1_p, g1_p, be1_p)
        ident = x_bf            # in_f == out_f; padded lanes are zero (bf16)

    if nk == 1:
        # Whole out1 block with a constant index map -> fetched once, resident.
        h_spec = pl.BlockSpec((n, out_f_p), lambda j, k: (0, 0))
    else:
        h_spec = pl.BlockSpec((n, tile_k), lambda j, k: (0, k))

    out_p = pl.pallas_call(
        stage2_kernel,
        out_shape=jax.ShapeDtypeStruct((n, out_f_p), jnp.float32),
        grid=(nt, nk),
        in_specs=[h_spec,
                  pl.BlockSpec((tile_k, tile_n), lambda j, k: (k, j)),
                  pl.BlockSpec((1, tile_n), lambda j, k: (0, j)),
                  pl.BlockSpec((1, tile_n), lambda j, k: (0, j)),
                  pl.BlockSpec((n, tile_n), lambda j, k: (0, j))],
        out_specs=pl.BlockSpec((n, tile_n), lambda j, k: (0, j)),
        compiler_params=cparams_2d,
        cost_estimate=cost2,
    )(out1, w2_p, g2_p, be2_p, ident)

    return out_p[:, :out_f].astype(x.dtype)


# --------------------------------------------------------------------------
# Parameter init + references
# --------------------------------------------------------------------------
def init_params(key, in_feature, out_feature):
    """Deterministic synthetic params matching the PyTorch module shapes.

    Linear weights are stored transposed: [in, out]."""
    ks = jax.random.split(key, 8)

    def lin(k, fan_in, fan_out):
        bound = 1.0 / jnp.sqrt(fan_in)
        kw, kb = jax.random.split(k)
        w = jax.random.uniform(kw, (fan_in, fan_out), jnp.float32, -bound, bound)
        b = jax.random.uniform(kb, (1, fan_out), jnp.float32, -bound, bound)
        return w, b

    w1, b1 = lin(ks[0], in_feature, out_feature)
    w2, b2 = lin(ks[1], out_feature, out_feature)
    g1 = 1.0 + 0.1 * jax.random.normal(ks[2], (1, out_feature), jnp.float32)
    be1 = 0.1 * jax.random.normal(ks[3], (1, out_feature), jnp.float32)
    g2 = 1.0 + 0.1 * jax.random.normal(ks[4], (1, out_feature), jnp.float32)
    be2 = 0.1 * jax.random.normal(ks[5], (1, out_feature), jnp.float32)

    params = dict(w1=w1, b1=b1, g1=g1, be1=be1, w2=w2, b2=b2, g2=g2, be2=be2)
    if in_feature != out_feature:
        wd, bd = lin(ks[6], in_feature, out_feature)
        params.update(wd=wd, bd=bd)
    return params


def resnet_block_ref_f32(x, params):
    """Exact PyTorch training-mode forward in f32 (includes b1/b2)."""
    def bn(v, g, b):
        m = v.mean(axis=0, keepdims=True)
        var = ((v - m) ** 2).mean(axis=0, keepdims=True)
        return (v - m) / jnp.sqrt(var + BN_EPS) * g + b

    out = x @ params["w1"] + params["b1"]
    out = jax.nn.relu(bn(out, params["g1"], params["be1"]))
    out = out @ params["w2"] + params["b2"]
    out = bn(out, params["g2"], params["be2"])
    identity = x @ params["wd"] + params["bd"] if "wd" in params else x
    return jax.nn.relu(out + identity)


def resnet_block_ref_mirror(x, params):
    """Mirrors the kernel's dtype strategy exactly (bf16 matmul operands and
    bf16 out1/ident, f32 accumulation, f32 two-pass BN, b1/b2 dropped)."""
    def bn(v, g, b):
        n = v.shape[0]
        mean = jnp.sum(v, axis=0, keepdims=True) / n
        d = v - mean
        var = jnp.sum(d * d, axis=0, keepdims=True) / n
        return d * (jax.lax.rsqrt(var + BN_EPS) * g) + b

    xb = x.astype(jnp.bfloat16)
    h = jnp.dot(xb, params["w1"].astype(jnp.bfloat16), preferred_element_type=jnp.float32)
    h = jax.nn.relu(bn(h, params["g1"], params["be1"]))
    hb = h.astype(jnp.bfloat16)
    out = jnp.dot(hb, params["w2"].astype(jnp.bfloat16), preferred_element_type=jnp.float32)
    out = bn(out, params["g2"], params["be2"])
    if "wd" in params:
        identity = (jnp.dot(xb, params["wd"].astype(jnp.bfloat16),
                            preferred_element_type=jnp.float32)
                    + params["bd"]).astype(jnp.bfloat16)
    else:
        identity = xb
    return jax.nn.relu(out + identity.astype(jnp.float32))


# --------------------------------------------------------------------------
if __name__ == "__main__":
    key = jax.random.PRNGKey(0)
    k1x, k1p, k2x, k2p, k3x, k3p, k4x, k4p = jax.random.split(key, 8)

    def check(name, o, x, p):
        m = resnet_block_ref_mirror(x, p)
        f = resnet_block_ref_f32(x, p)
        assert o.shape == m.shape, f"{name}: bad shape {o.shape}"
        assert jnp.allclose(o, m, atol=2e-4, rtol=2e-4), \
            f"{name}: mismatch vs bf16-mirror reference"
        assert jnp.allclose(o, f, atol=5e-2, rtol=5e-2), \
            f"{name}: mismatch vs f32 reference"

    # Case 1: downsample path (in != out) -> fused single-call kernel.
    x1 = jax.random.normal(k1x, (8, 16), jnp.float32)
    p1 = init_params(k1p, 16, 32)
    o1 = jax.block_until_ready(resnet_block(x1, p1))
    check("case1(fused,ds)", o1, x1, p1)

    # Case 2: identity path, fused, multiple feature tiles (tile_n=128 -> nt=2).
    x2 = jax.random.normal(k2x, (16, 256), jnp.float32)
    p2 = init_params(k2p, 256, 256)
    o2 = jax.block_until_ready(resnet_block(x2, p2, tile_n=128))
    check("case2(fused,id)", o2, x2, p2)

    # Case 3: forced two-stage fallback, downsample, K-tiled stage 2 (nt=2, nk=2).
    x3 = jax.random.normal(k3x, (16, 64), jnp.float32)
    p3 = init_params(k3p, 64, 256)
    o3 = jax.block_until_ready(
        resnet_block(x3, p3, tile_n=128, tile_k=128, force_two_stage=True))
    check("case3(2stage,ds)", o3, x3, p3)

    # Case 4: forced two-stage fallback, identity path, nk=1 (out1 VMEM-resident).
    x4 = jax.random.normal(k4x, (8, 128), jnp.float32)
    p4 = init_params(k4p, 128, 128)
    o4 = jax.block_until_ready(resnet_block(x4, p4, force_two_stage=True))
    check("case4(2stage,id)", o4, x4, p4)

    print("KERNEL_OK")
</pallas_src>

<mosaic_0001>
module attributes {stable_mosaic.version = 11 : i64} {
  func.func @fused_ds_kernel(%arg0: i32, %arg1: i32, %arg2: memref<8x128xbf16, #tpu.memory_space<vmem>>, %arg3: memref<128x256xbf16, #tpu.memory_space<vmem>>, %arg4: memref<1x128xf32, #tpu.memory_space<vmem>>, %arg5: memref<1x128xf32, #tpu.memory_space<vmem>>, %arg6: memref<1x128xf32, #tpu.memory_space<vmem>>, %arg7: memref<128x128xbf16, #tpu.memory_space<vmem>>, %arg8: memref<1x128xf32, #tpu.memory_space<vmem>>, %arg9: memref<1x128xf32, #tpu.memory_space<vmem>>, %arg10: memref<8x128xf32, #tpu.memory_space<vmem>>, %arg11: memref<8x128xbf16, #tpu.memory_space<vmem>>, %arg12: memref<8x128xbf16, #tpu.memory_space<vmem>>) attributes {dimension_semantics = [#tpu.dimension_semantics<arbitrary>, #tpu.dimension_semantics<arbitrary>], iteration_bounds = array<i64: 2, 1>, scalar_prefetch = 0 : i64, scratch_operands = 2 : i64, tpu.core_type = #tpu.core_type<tc>, window_params = [{pipeline_mode = #tpu.pipeline_mode<synchronous>, transform_indices = @transform_0, window_bounds = array<i64: 8, 128>}, {transform_indices = @transform_1, window_bounds = array<i64: 128, 256>}, {transform_indices = @transform_2, window_bounds = array<i64: 1, 128>}, {transform_indices = @transform_3, window_bounds = array<i64: 1, 128>}, {transform_indices = @transform_4, window_bounds = array<i64: 1, 128>}, {transform_indices = @transform_5, window_bounds = array<i64: 128, 128>}, {transform_indices = @transform_6, window_bounds = array<i64: 1, 128>}, {transform_indices = @transform_7, window_bounds = array<i64: 1, 128>}, {transform_indices = @transform_8, window_bounds = array<i64: 8, 128>}]} {
    %c128_i32 = arith.constant 128 : i32
    %0 = arith.muli %arg1, %c128_i32 : i32
    %1 = tpu.assume_multiple %0, 128 : i32
    %c0_i32 = arith.constant 0 : i32
    %2 = arith.cmpi eq, %arg0, %c0_i32 : i32
    %3 = arith.extui %2 : i1 to i32
    %c0_i32_0 = arith.constant 0 : i32
    %4 = arith.cmpi ne, %3, %c0_i32_0 : i32
    scf.if %4 {
      %c0 = arith.constant 0 : index
      %c0_2 = arith.constant 0 : index
      %8 = vector.load %arg2[%c0, %c0_2] : memref<8x128xbf16, #tpu.memory_space<vmem>>, vector<8x128xbf16>
      %c0_3 = arith.constant 0 : index
      %c0_4 = arith.constant 0 : index
      %9 = vector.load %arg3[%c0_3, %c0_4] : memref<128x256xbf16, #tpu.memory_space<vmem>>, vector<128x256xbf16>
      %cst = arith.constant dense<0.000000e+00> : vector<8x256xf32>
      %10 = tpu.matmul %8, %9, %cst {dimension_numbers = #tpu.dot_dimension_numbers<[1], [0], [0], [1], [0, 0, 1, 1], [], []>} : vector<8x128xbf16>, vector<128x256xbf16>, vector<8x256xf32> -> vector<8x256xf32>
      %11 = vector.extract_strided_slice %10 {offsets = [0, 0], sizes = [8, 128], strides = [1, 1]} : vector<8x256xf32> to vector<8x128xf32>
      %c0_5 = arith.constant 0 : index
      %c0_6 = arith.constant 0 : index
      %12 = vector.load %arg4[%c0_5, %c0_6] : memref<1x128xf32, #tpu.memory_space<vmem>>, vector<1x128xf32>
      %c0_7 = arith.constant 0 : index
      %c0_8 = arith.constant 0 : index
      %13 = vector.load %arg5[%c0_7, %c0_8] : memref<1x128xf32, #tpu.memory_space<vmem>>, vector<1x128xf32>
      %cst_9 = arith.constant dense<0.000000e+00> : vector<128xf32>
      %14 = vector.multi_reduction <add>, %11, %cst_9 [0] : vector<8x128xf32> to vector<128xf32>
      %15 = vector.shape_cast %14 : vector<128xf32> to vector<1x128xf32>
      %cst_10 = arith.constant 1.250000e-01 : f32
      %16 = vector.broadcast %cst_10 : f32 to vector<1x128xf32>
      %17 = arith.mulf %15, %16 : vector<1x128xf32>
      %18 = vector.broadcast %17 : vector<1x128xf32> to vector<8x128xf32>
      %19 = arith.subf %11, %18 : vector<8x128xf32>
      %20 = arith.mulf %19, %19 : vector<8x128xf32>
      %cst_11 = arith.constant dense<0.000000e+00> : vector<128xf32>
      %21 = vector.multi_reduction <add>, %20, %cst_11 [0] : vector<8x128xf32> to vector<128xf32>
      %22 = vector.shape_cast %21 : vector<128xf32> to vector<1x128xf32>
      %cst_12 = arith.constant 1.250000e-01 : f32
      %23 = vector.broadcast %cst_12 : f32 to vector<1x128xf32>
      %24 = arith.mulf %22, %23 : vector<1x128xf32>
      %cst_13 = arith.constant 9.99999974E-6 : f32
      %25 = vector.broadcast %cst_13 : f32 to vector<1x128xf32>
      %26 = arith.addf %24, %25 : vector<1x128xf32>
      %27 = math.rsqrt %26 : vector<1x128xf32>
      %28 = arith.mulf %27, %12 : vector<1x128xf32>
      %29 = vector.broadcast %28 : vector<1x128xf32> to vector<8x128xf32>
      %30 = arith.mulf %19, %29 : vector<8x128xf32>
      %31 = vector.broadcast %13 : vector<1x128xf32> to vector<8x128xf32>
      %32 = arith.addf %30, %31 : vector<8x128xf32>
      %cst_14 = arith.constant 0.000000e+00 : f32
      %33 = vector.broadcast %cst_14 : f32 to vector<8x128xf32>
      %34 = arith.maximumf %32, %33 : vector<8x128xf32>
      %35 = arith.truncf %34 : vector<8x128xf32> to vector<8x128xbf16>
      %c0_15 = arith.constant 0 : index
      %36 = arith.index_cast %1 : i32 to index
      %37 = vector.load %arg11[%c0_15, %36] : memref<8x128xbf16, #tpu.memory_space<vmem>>, vector<8x128xbf16>
      tpu.vector_store %arg11[%c0_15, %36], %35 {strides = array<i32>} : memref<8x128xbf16, #tpu.memory_space<vmem>>, vector<8x128xbf16>,
      %38 = vector.extract_strided_slice %10 {offsets = [0, 128], sizes = [8, 128], strides = [1, 1]} : vector<8x256xf32> to vector<8x128xf32>
      %c0_16 = arith.constant 0 : index
      %c0_17 = arith.constant 0 : index
      %39 = vector.load %arg6[%c0_16, %c0_17] : memref<1x128xf32, #tpu.memory_space<vmem>>, vector<1x128xf32>
      %40 = vector.broadcast %39 : vector<1x128xf32> to vector<8x128xf32>
      %41 = arith.addf %38, %40 : vector<8x128xf32>
      %42 = arith.truncf %41 : vector<8x128xf32> to vector<8x128xbf16>
      %c0_18 = arith.constant 0 : index
      %43 = arith.index_cast %1 : i32 to index
      %44 = vector.load %arg12[%c0_18, %43] : memref<8x128xbf16, #tpu.memory_space<vmem>>, vector<8x128xbf16>
      tpu.vector_store %arg12[%c0_18, %43], %42 {strides = array<i32>} : memref<8x128xbf16, #tpu.memory_space<vmem>>, vector<8x128xbf16>,
    } else {
    }
    %c1_i32 = arith.constant 1 : i32
    %5 = arith.cmpi eq, %arg0, %c1_i32 : i32
    %6 = arith.extui %5 : i1 to i32
    %c0_i32_1 = arith.constant 0 : i32
    %7 = arith.cmpi ne, %6, %c0_i32_1 : i32
    scf.if %7 {
      %c0 = arith.constant 0 : index
      %c0_2 = arith.constant 0 : index
      %8 = vector.load %arg11[%c0, %c0_2] : memref<8x128xbf16, #tpu.memory_space<vmem>>, vector<8x128xbf16>
      %c0_3 = arith.constant 0 : index
      %c0_4 = arith.constant 0 : index
      %9 = vector.load %arg7[%c0_3, %c0_4] : memref<128x128xbf16, #tpu.memory_space<vmem>>, vector<128x128xbf16>
      %cst = arith.constant dense<0.000000e+00> : vector<8x128xf32>
      %10 = tpu.matmul %8, %9, %cst {dimension_numbers = #tpu.dot_dimension_numbers<[1], [0], [0], [1], [0, 0, 1, 1], [], []>} : vector<8x128xbf16>, vector<128x128xbf16>, vector<8x128xf32> -> vector<8x128xf32>
      %c0_5 = arith.constant 0 : index
      %c0_6 = arith.constant 0 : index
      %11 = vector.load %arg8[%c0_5, %c0_6] : memref<1x128xf32, #tpu.memory_space<vmem>>, vector<1x128xf32>
      %c0_7 = arith.constant 0 : index
      %c0_8 = arith.constant 0 : index
      %12 = vector.load %arg9[%c0_7, %c0_8] : memref<1x128xf32, #tpu.memory_space<vmem>>, vector<1x128xf32>
      %cst_9 = arith.constant dense<0.000000e+00> : vector<128xf32>
      %13 = vector.multi_reduction <add>, %10, %cst_9 [0] : vector<8x128xf32> to vector<128xf32>
      %14 = vector.shape_cast %13 : vector<128xf32> to vector<1x128xf32>
      %cst_10 = arith.constant 1.250000e-01 : f32
      %15 = vector.broadcast %cst_10 : f32 to vector<1x128xf32>
      %16 = arith.mulf %14, %15 : vector<1x128xf32>
      %17 = vector.broadcast %16 : vector<1x128xf32> to vector<8x128xf32>
      %18 = arith.subf %10, %17 : vector<8x128xf32>
      %19 = arith.mulf %18, %18 : vector<8x128xf32>
      %cst_11 = arith.constant dense<0.000000e+00> : vector<128xf32>
      %20 = vector.multi_reduction <add>, %19, %cst_11 [0] : vector<8x128xf32> to vector<128xf32>
      %21 = vector.shape_cast %20 : vector<128xf32> to vector<1x128xf32>
      %cst_12 = arith.constant 1.250000e-01 : f32
      %22 = vector.broadcast %cst_12 : f32 to vector<1x128xf32>
      %23 = arith.mulf %21, %22 : vector<1x128xf32>
      %cst_13 = arith.constant 9.99999974E-6 : f32
      %24 = vector.broadcast %cst_13 : f32 to vector<1x128xf32>
      %25 = arith.addf %23, %24 : vector<1x128xf32>
      %26 = math.rsqrt %25 : vector<1x128xf32>
      %27 = arith.mulf %26, %11 : vector<1x128xf32>
      %28 = vector.broadcast %27 : vector<1x128xf32> to vector<8x128xf32>
      %29 = arith.mulf %18, %28 : vector<8x128xf32>
      %30 = vector.broadcast %12 : vector<1x128xf32> to vector<8x128xf32>
      %31 = arith.addf %29, %30 : vector<8x128xf32>
      %c0_14 = arith.constant 0 : index
      %32 = arith.index_cast %1 : i32 to index
      %33 = vector.load %arg12[%c0_14, %32] : memref<8x128xbf16, #tpu.memory_space<vmem>>, vector<8x128xbf16>
      %34 = arith.extf %33 : vector<8x128xbf16> to vector<8x128xf32>
      %35 = arith.addf %31, %34 : vector<8x128xf32>
      %cst_15 = arith.constant 0.000000e+00 : f32
      %36 = vector.broadcast %cst_15 : f32 to vector<8x128xf32>
      %37 = arith.maximumf %35, %36 : vector<8x128xf32>
      %c0_16 = arith.constant 0 : index
      %c0_17 = arith.constant 0 : index
      %38 = vector.load %arg10[%c0_16, %c0_17] : memref<8x128xf32, #tpu.memory_space<vmem>>, vector<8x128xf32>
      tpu.vector_store %arg10[%c0_16, %c0_17], %37 {strides = array<i32>} : memref<8x128xf32, #tpu.memory_space<vmem>>, vector<8x128xf32>,
    } else {
    }
    return
  }
  func.func @transform_0(%arg0: i32, %arg1: i32) -> (i32, i32) {
    %c0_i32 = arith.constant 0 : i32
    %c0_i32_0 = arith.constant 0 : i32
    %c0_i32_1 = arith.constant 0 : i32
    return %c0_i32, %c0_i32_0 : i32, i32
  }
  func.func @transform_1(%arg0: i32, %arg1: i32) -> (i32, i32) {
    %c1_i32 = arith.constant 1 : i32
    %0 = arith.subi %c1_i32, %arg0 : i32
    %1 = arith.muli %arg1, %0 : i32
    %c0_i32 = arith.constant 0 : i32
    %2 = arith.muli %c0_i32, %arg0 : i32
    %3 = arith.addi %1, %2 : i32
    %c0_i32_0 = arith.constant 0 : i32
    %c0_i32_1 = arith.constant 0 : i32
    return %c0_i32_0, %3 : i32, i32
  }
  func.func @transform_2(%arg0: i32, %arg1: i32) -> (i32, i32) {
    %c1_i32 = arith.constant 1 : i32
    %0 = arith.subi %c1_i32, %arg0 : i32
    %1 = arith.muli %arg1, %0 : i32
    %c0_i32 = arith.constant 0 : i32
    %2 = arith.muli %c0_i32, %arg0 : i32
    %3 = arith.addi %1, %2 : i32
    %c0_i32_0 = arith.constant 0 : i32
    %c0_i32_1 = arith.constant 0 : i32
    return %c0_i32_0, %3 : i32, i32
  }
  func.func @transform_3(%arg0: i32, %arg1: i32) -> (i32, i32) {
    %c1_i32 = arith.constant 1 : i32
    %0 = arith.subi %c1_i32, %arg0 : i32
    %1 = arith.muli %arg1, %0 : i32
    %c0_i32 = arith.constant 0 : i32
    %2 = arith.muli %c0_i32, %arg0 : i32
    %3 = arith.addi %1, %2 : i32
    %c0_i32_0 = arith.constant 0 : i32
    %c0_i32_1 = arith.constant 0 : i32
    return %c0_i32_0, %3 : i32, i32
  }
  func.func @transform_4(%arg0: i32, %arg1: i32) -> (i32, i32) {
    %c1_i32 = arith.constant 1 : i32
    %0 = arith.subi %c1_i32, %arg0 : i32
    %1 = arith.muli %arg1, %0 : i32
    %c0_i32 = arith.constant 0 : i32
    %2 = arith.muli %c0_i32, %arg0 : i32
    %3 = arith.addi %1, %2 : i32
    %c0_i32_0 = arith.constant 0 : i32
    %c0_i32_1 = arith.constant 0 : i32
    return %c0_i32_0, %3 : i32, i32
  }
  func.func @transform_5(%arg0: i32, %arg1: i32) -> (i32, i32) {
    %0 = arith.muli %arg1, %arg0 : i32
    %c0_i32 = arith.constant 0 : i32
    %c0_i32_0 = arith.constant 0 : i32
    return %c0_i32, %0 : i32, i32
  }
  func.func @transform_6(%arg0: i32, %arg1: i32) -> (i32, i32) {
    %0 = arith.muli %arg1, %arg0 : i32
    %c0_i32 = arith.constant 0 : i32
    %c0_i32_0 = arith.constant 0 : i32
    return %c0_i32, %0 : i32, i32
  }
  func.func @transform_7(%arg0: i32, %arg1: i32) -> (i32, i32) {
    %0 = arith.muli %arg1, %arg0 : i32
    %c0_i32 = arith.constant 0 : i32
    %c0_i32_0 = arith.constant 0 : i32
    return %c0_i32, %0 : i32, i32
  }
  func.func @transform_8(%arg0: i32, %arg1: i32) -> (i32, i32) {
    %0 = arith.muli %arg1, %arg0 : i32
    %c0_i32 = arith.constant 0 : i32
    %c0_i32_0 = arith.constant 0 : i32
    return %c0_i32, %0 : i32, i32
  }
}

</mosaic_0001>

<bundles_post_ra>
// kernel: tpu_custom_call.1
= control target key start
LH: loop header
LB: loop body
LE: loop exit
PB: predicated region body
PF: predicated region fallthrough
CT: control target
= control target key end

     0   :  { %13 = vsyncpa [#allocation5], 0  ;;  %s1617_s0 = inlined_call_operand.hbm [shape: bf16[8,128], index: 0, kind: input, shape index: {}]   ;;  %s1618_s1 = inlined_call_operand.hbm [shape: bf16[128,256], index: 1, kind: input, shape index: {}]   ;;  %s1619_s2 = inlined_call_operand.vmem [shape: f32[1,128], index: 2, kind: input, shape index: {}]   ;;  %s1620_s3 = inlined_call_operand.vmem [shape: f32[1,128], index: 3, kind: input, shape index: {}]   ;;  %s1621_s4 = inlined_call_operand.vmem [shape: f32[1,128], index: 4, kind: input, shape index: {}]   ;;  %s1622_s5 = inlined_call_operand.hbm [shape: bf16[128,128], index: 5, kind: input, shape index: {}]   ;;  %s1623_s6 = inlined_call_operand.vmem [shape: f32[1,128], index: 6, kind: input, shape index: {}]   ;;  %s1624_s7 = inlined_call_operand.vmem [shape: f32[1,128], index: 7, kind: input, shape index: {}]   ;;  %s1625_s8 = inlined_call_operand.hbm [shape: f32[8,128], index: 8, kind: output, shape index: {}]  }
   0x1   :  { %14 = vsyncpa [#allocation8], 0 }
   0x2   :  { %16 = vsyncpa [#allocation8 + $0x1], 0 }
   0x3   :  { %17 = vsyncpa [#allocation6], 0 }
   0x4   :  { %19 = vsyncpa [#allocation6 + $0x1], 0  ;;  %s1442_s27 = smov 0   ;;  %s1444_s28 = smov 0  }
   0x5   :  { %s1446_s29 = smov 0  }
   0x6 LB: > { %s1386_s30 = smov [#allocation7]   ;;  %s1051_s10 = sadd.s32 4294967294, %s1384_s29   ;;  %s1384_s29 = sphi %s1446_s29, %s25_s29   ;;  %s1380_s28 = sphi %s1444_s28, %s1644_s28   ;;  %s1376_s27 = sphi %s1442_s27, %s1643_s27  }
   0x7   : > { %s332_s9 = sshll.u32 %s1386_s30, 4  ;;  %p1160_p1 = scmp.lt.s32.totalorder %s1384_s29, 2  ;;  %s333_s9 = int_to_ptr.vmem [resolvable:$true] %s332_s9 }
   0x8   : > { %p1161_p2 = scmp.eq.s32.totalorder %s1384_s29, 0  ;;  %s319_s11 = sand.u32 1, %s1384_s29  }
   0x9   : > { %s1466_s13 = scalar_lea.sflag [#allocation8], %s319_s11  ;;  %s1240_s16 = scalar_lea.hbm %s1618_s1, 2048 }
   0xa   : > { %p1462_p3 = pnand %p1161_p2, %p1160_p1  ;;  %p1241_p4 = scmp.ne.s32.totalorder %s1618_s1, %s1240_s16 }
   0xb   : > { %p1247_p8 = scmp.lt.u32.totalorder %s1240_s16, %s1618_s1 }
   0xc   : > { %s1631_s12 = scalar_select %p1462_p3, 1, 0 }
   0xd   : > { %p1627_p5 = pneg %p1462_p3 }
   0xf   : > { %p1243_p6 = pnand %p1627_p5, %p1241_p4 }
  0x11   : > { %p1244_p7 = pneg %p1243_p6 }
  0x13   : > { %p1249_p9 = pnand %p1247_p8, %p1244_p7 }
  0x15   : > { %1252 = shalt.err (!%p1249_p9)
}
  0x16   : > { %s1253_s21 = scalar_lea.vmem %s333_s9, 2048  ;;  %s1260_s22 = scalar_lea.vmem %s333_s9, 4096 }
  0x17   : > { %p1254_p10 = scmp.ne.s32.totalorder %s333_s9, %s1253_s21  ;;  %p1261_p13 = scmp.lt.s32.totalorder %s333_s9, %s333_s9 }
  0x18   : > { %p1262_p1 = scmp.lt.s32.totalorder %s1260_s22, %s1253_s21 }
  0x19   : > { %p1256_p11 = pnand %p1254_p10, %p1627_p5 }
  0x1a   : > { %p1263_p2 = por %p1262_p1, %p1261_p13 }
  0x1b   : > { %p1257_p12 = pneg %p1256_p11 }
  0x1d   : > { %p1264_p0 = pnand %p1263_p2, %p1257_p12 }
  0x1f   : > { %1267 = shalt.err (!%p1264_p0)
}
  0x20   : > { %s1387_s23 = smov 128   ;;  %s1388_s24 = smov 8  }
  0x21   : > { %1151 = dma.hbm_to_vmem [thread:$0]  (!%p1462_p3), %s1618_s1, 2048, %s333_s9, %s1466_s13, %s1387_s23, %s1387_s23, %s1388_s24  }
  0x22   : > { %s1492_s30 = sadd.s32 4294967295, %s1384_s29   ;;  %s37_s11 = sadd.s32 1, %s1380_s28 }
  0x23   : > { %p39_p4 = scmp.ge.s32.totalorder %s37_s11, 2  ;;  %p1052_p0 = scmp.ge.s32.totalorder %s1384_s29, 1 }
  0x24   : > { %p295_p6 = scmp.lt.s32.totalorder %s1384_s29, 3  ;;  %p1626_p8 = scmp.eq.s32.totalorder %s1492_s30, 0 }
  0x25   : > { %s1646_s11 = smov (%p39_p4, %s37_s11), 0  ;;  %s1389_s15 = smov [#allocation4]  }
  0x26   : > { %p1499_p7 = pnand %p1052_p0, %p295_p6  ;;  %s308_s9 = sshll.u32 %s1389_s15, 4  ;;  %s309_s9 = int_to_ptr.vmem [resolvable:$true] %s308_s9 }
  0x27   : > { %s1390_s16 = smov [#allocation9]   ;;  %s1268_s21 = scalar_lea.hbm %s1617_s0, 64 }
  0x28   : > { %s1632_s14 = scalar_select %p1499_p7, 1, 0 }
  0x29   : > { %p1144_p9 = pneg %p1499_p7  ;;  %s383_s17 = sshll.u32 %s1390_s16, 4  ;;  %s1512_s17 = int_to_ptr.vmem [resolvable:$true] %s383_s17 }
  0x2a   : > { %p1269_p11 = scmp.ne.s32.totalorder %s1617_s0, %s1268_s21  ;;  %p1275_p2 = scmp.lt.u32.totalorder %s1268_s21, %s1617_s0 }
  0x2b   : > { %p1508_p10 = pnand %p1626_p8, %p1144_p9 }
  0x2d   : > { %p1270_p12 = pneg %p1508_p10 }
  0x2f   : > { %p1271_p13 = pnand %p1270_p12, %p1269_p11 }
  0x31   : > { %p1272_p1 = pneg %p1271_p13 }
  0x33   : > { %p1277_p4 = pnand %p1275_p2, %p1272_p1 }
  0x35   : > { %1280 = shalt.err (!%p1277_p4)
}
  0x36   : > { %s1281_s26 = scalar_lea.vmem %s309_s9, 64  ;;  %p1289_p8 = scmp.lt.s32.totalorder %s309_s9, %s309_s9 }
  0x37   : > { %p1282_p0 = scmp.ne.s32.totalorder %s309_s9, %s1281_s26  ;;  %p1290_p5 = scmp.lt.s32.totalorder %s1281_s26, %s1281_s26 }
  0x39   : > { %p1284_p6 = pnand %p1282_p0, %p1270_p12  ;;  %p1291_p7 = por %p1290_p5, %p1289_p8 }
  0x3b   : > { %p1285_p9 = pneg %p1284_p6 }
  0x3d   : > { %p1292_p3 = pnand %p1291_p7, %p1285_p9 }
  0x3f   : > { %1295 = shalt.err (!%p1292_p3)
}
  0x40   : > { %1147 = dma.hbm_to_vmem [thread:$0]  (!%p1508_p10), %s1617_s0, 64, %s309_s9, [#allocation5]  }
  0x41   : > { %s1296_s21 = scalar_lea.hbm %s1622_s5, 1024  ;;  %p1634_p12 = scmp.ne.s32.totalorder %s1631_s12, 0 }
  0x42   : > { %p1297_p11 = scmp.ne.s32.totalorder %s1622_s5, %s1296_s21  ;;  %p1303_p3 = scmp.lt.u32.totalorder %s1296_s21, %s1622_s5 }
  0x43   : > { %p1635_p13 = pneg %p1634_p12 }
  0x45   : > { %p1299_p5 = pnand %p1297_p11, %p1635_p13 }
  0x47   : > { %p1300_p7 = pneg %p1299_p5 }
  0x49   : > { %p1305_p8 = pnand %p1303_p3, %p1300_p7 }
  0x4b   : > { %1308 = shalt.err (!%p1305_p8)
}
  0x4c   : > { %s1309_s9 = scalar_lea.vmem %s1512_s17, 1024  ;;  %p1636_p1 = pmov %p1635_p13 }
  0x4d   : > { %p1310_p10 = scmp.ne.s32.totalorder %s1512_s17, %s1309_s9  ;;  %s1316_s18 = scalar_lea.vmem %s1512_s17, 2048 }
  0x4e   : > { %p1317_p0 = scmp.lt.s32.totalorder %s1512_s17, %s1512_s17  ;;  %p1318_p6 = scmp.lt.s32.totalorder %s1316_s18, %s1309_s9 }
  0x4f   : > { %p1312_p2 = pnand %p1310_p10, %p1636_p1 }
  0x50   : > { %p1319_p9 = por %p1318_p6, %p1317_p0 }
  0x51   : > { %p1313_p4 = pneg %p1312_p2 }
  0x53   : > { %p1320_p11 = pnand %p1319_p9, %p1313_p4 }
  0x55   : > { %1323 = shalt.err (!%p1320_p11)
}
  0x56   : > { %s1391_s26 = smov 64   ;;  %s1392_s15 = smov 4  }
  0x57   : > { %1154 = dma.hbm_to_vmem [thread:$0]  (!%p1634_p12), %s1622_s5, 1024, %s1512_s17, %s1466_s13, %s1391_s26, %s1391_s26, %s1392_s15  }
  0x58   : > { %p1637_p13 = scmp.ne.s32.totalorder %s1632_s14, 0 }
  0x59   : > { %p1638_p5 = scmp.eq.s32.totalorder (!%p1637_p13), %s1492_s30, 0 }
  0x5a   : > { %411 = sbr.rel (%p1637_p13) target bundleno = 732 (0x2dc), region = 52 }
  0x61   : > { %1363 = dma.done.wait (%p1638_p5), [#allocation5], 64   ;;  %p1639_p7 = pmov %p1638_p5 }
  0x62   : > { %s417_s20 = sand.u32 1, %s1492_s30   ;;  %p1640_p3 = pmov %p1638_p5 }
  0x63   : > { %1365 = vsyncadd (%p1639_p7), [#allocation5], 4294967232  ;;  %s418_s21 = scalar_lea.sflag [#allocation8], %s417_s20 }
  0x64   : > { %1367 = dma.done.wait (%p1640_p3), %s418_s21, 3072   ;;  %p1641_p8 = pmov %p1640_p3 }
  0x65   : > { %p1066_p12 = scmp.ne.s32.totalorder %s1376_s27, 0 }
  0x66   : > { %1369 = vsyncadd (%p1641_p8), %s418_s21, 4294964224  ;;  %v1204_v0 = vld [vmem:[#allocation7 + $0x4] ss:$8 sps:$4 sm:$0xff] (!%p1066_p12)   ;;  %v1206_v1 = vld [vmem:[#allocation7] ss:$8 sps:$4 sm:$0xff] (!%p1066_p12)   ;;  %v1393_v2 = vmov (!%p1066_p12), 0   ;;  %v692_v42 = vlaneseq (!%p1066_p12) }
  0x67   : > { %532 = sbr.rel (%p1066_p12) target bundleno = 405 (0x195), region = 68  ;;  %662 = vmatprep.mubr.bf16.mxu0 (!%p1066_p12), %v1393_v2  ;;  %630 = vmatprep.subr.bf16.mxu0 (!%p1066_p12), %v1204_v0  ;;  %v1207_v3 = vld [vmem:[#allocation7 + $0x14] ss:$8 sps:$4 sm:$0xff] (!%p1066_p12)   ;;  %v1209_v4 = vld [vmem:[#allocation7 + $0x10] ss:$8 sps:$4 sm:$0xff] (!%p1066_p12)  }
  0x68   : > { %631 = vmatpush1.bf16.msra.mxu0 (!%p1066_p12), %v1206_v1  ;;  %v1210_v5 = vld [vmem:[#allocation7 + $0x24] ss:$8 sps:$4 sm:$0xff] (!%p1066_p12)   ;;  %v1212_v6 = vld [vmem:[#allocation7 + $0x20] ss:$8 sps:$4 sm:$0xff] (!%p1066_p12)   ;;  %v1213_v7 = vld [vmem:[#allocation7 + $0x34] ss:$8 sps:$4 sm:$0xff] (!%p1066_p12)  }
  0x69   : > { %632 = vmatprep.subr.bf16.mxu0 (!%p1066_p12), %v1207_v3  ;;  %v1215_v8 = vld [vmem:[#allocation7 + $0x30] ss:$8 sps:$4 sm:$0xff] (!%p1066_p12)   ;;  %v1216_v9 = vld [vmem:[#allocation7 + $0x44] ss:$8 sps:$4 sm:$0xff] (!%p1066_p12)   ;;  %v1218_v10 = vld [vmem:[#allocation7 + $0x40] ss:$8 sps:$4 sm:$0xff] (!%p1066_p12)  }
  0x6a   : > { %v1219_v11 = vld [vmem:[#allocation7 + $0x54] ss:$8 sps:$4 sm:$0xff] (!%p1066_p12)   ;;  %v1221_v12 = vld [vmem:[#allocation7 + $0x50] ss:$8 sps:$4 sm:$0xff] (!%p1066_p12)   ;;  %v1222_v13 = vld [vmem:[#allocation7 + $0x64] ss:$8 sps:$4 sm:$0xff] (!%p1066_p12)  }
  0x6b   : > { %v1224_v14 = vld [vmem:[#allocation7 + $0x60] ss:$8 sps:$4 sm:$0xff] (!%p1066_p12)   ;;  %v1225_v15 = vld [vmem:[#allocation7 + $0x74] ss:$8 sps:$4 sm:$0xff] (!%p1066_p12)   ;;  %v1227_v16 = vld [vmem:[#allocation7 + $0x70] ss:$8 sps:$4 sm:$0xff] (!%p1066_p12)  }
  0x6c   : > { %633 = vmatpush1.bf16.msra.mxu0 (!%p1066_p12), %v1209_v4  ;;  %v533_v17 = vld [vmem:[#allocation4] sm:$0xf] (!%p1066_p12)  ;;  %v1084_v18 = vld [vmem:[%s1621_s4] ss:$0 sm:$0xff] (!%p1066_p12)  ;;  %v693_v43 = vshrl.u32 (!%p1066_p12), %v692_v42, 7 }
  0x6d   : > { %634 = vmatprep.subr.bf16.mxu0 (!%p1066_p12), %v1210_v5  ;;  %v671_v44 = vld [vmem:[%s1619_s2] sm:$0x1] (!%p1066_p12) }
  0x6e   : > { %v694_v45 = vsub.s32 0, %v693_v43  ;;  %v1083_v49 = vld [vmem:[%s1620_s3] ss:$0 sm:$0xff] }
  0x70   : > { %635 = vmatpush1.bf16.msra.mxu0 %v1212_v6 }
  0x71   : > { %636 = vmatprep.subr.bf16.mxu0 %v1213_v7 }
  0x74   : > { %637 = vmatpush1.bf16.msra.mxu0 %v1215_v8 }
  0x75   : > { %638 = vmatprep.subr.bf16.mxu0 %v1216_v9 }
  0x78   : > { %639 = vmatpush1.bf16.msra.mxu0 %v1218_v10 }
  0x79   : > { %640 = vmatprep.subr.bf16.mxu0 %v1219_v11 }
  0x7c   : > { %641 = vmatpush1.bf16.msra.mxu0 %v1221_v12 }
  0x7d   : > { %642 = vmatprep.subr.bf16.mxu0 %v1222_v13 }
  0x80   : > { %643 = vmatpush1.bf16.msra.mxu0 %v1224_v14 }
  0x81   : > { %644 = vmatprep.subr.bf16.mxu0 %v1225_v15 }
  0x84   : > { %645 = vmatpush1.bf16.msra.mxu0 %v1227_v16 }
  0x87   : > { %663 = vmatmul.mubr.bf16.vlgmr.msra.gmra.mrb[0].mxu0 %v533_v17 }
 0x15a   : > { %v664_v19 = vpop.f32.mrb[0].mxu0 }
 0x15b   : > { %v673_v20 = vrot.slane %v664_v19, 4  ;;  %v666_v21 = vpop.f32.mrb[1].mxu0 }
 0x15c   : > { %v718_v22 = vadd.f32 %v1084_v18, %v666_v21  ;;  %v668_v23 = vpop.f32.mrb[2].mxu0 }
 0x15d   : > { %v674_v24 = vadd.f32 %v673_v20, %v664_v19  ;;  %v669_v25 = vpop.f32.mrb[3].mxu0 }
 0x15e   : > { %v719_v26 = vpack.c.bf16 %v718_v22, %v718_v22 }
 0x15f   : > { %v675_v27 = vrot.slane %v674_v24, 2 }
 0x160   : > { %722 = vst [vmem:[#allocation3] sm:$0xf] %v719_v26 }
 0x161   : > { %v676_v28 = vadd.f32 %v675_v27, %v674_v24 }
 0x163   : > { %v677_v29 = vrot.slane %v676_v28, 1 }
 0x165   : > { %v678_v30 = vadd.f32 %v677_v29, %v676_v28 }
 0x167   : > { %v679_v31 = vmul.f32 0.125, %v678_v30 }
 0x169   : > { %v680_v32 = vsub.f32 %v664_v19, %v679_v31 }
 0x16b   : > { %v681_v33 = vmul.f32 %v680_v32, %v680_v32 }
 0x16d   : > { %v682_v34 = vrot.slane %v681_v33, 4 }
 0x16f   : > { %v683_v35 = vadd.f32 %v682_v34, %v681_v33 }
 0x171   : > { %v684_v36 = vrot.slane %v683_v35, 2 }
 0x173   : > { %v685_v37 = vadd.f32 %v684_v36, %v683_v35 }
 0x175   : > { %v686_v38 = vrot.slane %v685_v37, 1 }
 0x177   : > { %v687_v39 = vadd.f32 %v686_v38, %v685_v37 }
 0x179   : > { %v688_v40 = vmul.f32 0.125, %v687_v39 }
 0x17b   : > { %v689_v41 = vadd.f32 1e-05, %v688_v40 }
 0x17d   : > { %1228 = vrsqrt.f32 %v689_v41 }
 0x187   : > { %v1229_v46 = vpop.eup %1228 }
 0x188   : > { %v691_v47 = vmul.f32 %v1229_v46, %v671_v44 }
 0x18a   : > { %v695_v48 = vrot.slane %v691_v47, %v694_v45 }
 0x18c   : > { %v696_v50 = vmul.f32 %v695_v48, %v680_v32 }
 0x18e   : > { %v703_v51 = vadd.f32 %v1083_v49, %v696_v50 }
 0x190   : > { %v704_v52 = vmax.f32 %v703_v51, 0.0 }
 0x192   : > { %v705_v53 = vpack.c.bf16 %v704_v52, %v704_v52 }
 0x194   : > { %710 = vst [vmem:[#allocation2] sm:$0xf] %v705_v53 }
 0x195 PF: > { %p1085_p10 = scmp.ne.s32.totalorder %s1376_s27, 1 }
 0x196   : > { %v1230_v54 = vld [vmem:[#allocation9] sm:$0xff] (!%p1085_p10)   ;;  %v1394_v55 = vmov (!%p1085_p10), 0.0   ;;  %v1231_v56 = vld [vmem:[#allocation9 + $0x8] sm:$0xff] (!%p1085_p10)   ;;  %vm1395_vm0 = vmmov (!%p1085_p10), 0   ;;  %v1232_v57 = vld [vmem:[#allocation9 + $0x10] sm:$0xff] (!%p1085_p10)   ;;  %v853_v21 = vlaneseq (!%p1085_p10) }
 0x197   : > { %726 = sbr.rel (%p1085_p10) target bundleno = 709 (0x2c5), region = 72  ;;  %1108 = vmatprep.subr.bf16.mxu0 (!%p1085_p10), %v1394_v55  ;;  %1124 = vmatprep.mubr.msk.bf16.mxu0 (!%p1085_p10), %vm1395_vm0, %v1394_v55  ;;  %v1233_v58 = vld [vmem:[#allocation9 + $0x18] sm:$0xff] (!%p1085_p10)   ;;  %v1234_v59 = vld [vmem:[#allocation9 + $0x20] sm:$0xff] (!%p1085_p10)   ;;  %v1235_v60 = vld [vmem:[#allocation9 + $0x28] sm:$0xff] (!%p1085_p10)  }
 0x198   : > { %1109 = vmatpush3.bf16.msra.mxu0 (!%p1085_p10), %v1230_v54  ;;  %v1236_v61 = vld [vmem:[#allocation9 + $0x30] sm:$0xff] (!%p1085_p10)   ;;  %v1237_v62 = vld [vmem:[#allocation9 + $0x38] sm:$0xff] (!%p1085_p10)   ;;  %v854_v22 = vshrl.u32 (!%p1085_p10), %v853_v21, 7 }
 0x199   : > { %1110 = vmatprep.subr.bf16.mxu0 (!%p1085_p10), %v1394_v55  ;;  %v832_v23 = vld [vmem:[%s1623_s6] sm:$0x1] (!%p1085_p10)  ;;  %v869_v27 = vld [vmem:[#allocation3] sm:$0xf] (!%p1085_p10) }
 0x19a   : > { %v855_v24 = vsub.s32 (!%p1085_p10), 0, %v854_v22  ;;  %v1094_v29 = vld [vmem:[%s1624_s7] ss:$0 sm:$0xff] (!%p1085_p10)  ;;  %v870_v31 = vunpack.c.l.bf16 (!%p1085_p10), %v869_v27 }
 0x19b   : > { %v727_v63 = vld [vmem:[#allocation2] sm:$0xf] (!%p1085_p10) }
 0x19c   : > { %1111 = vmatpush3.bf16.msra.mxu0 (!%p1085_p10), %v1231_v56 }
 0x19d   : > { %1112 = vmatprep.subr.bf16.mxu0 (!%p1085_p10), %v1394_v55 }
 0x1a0   : > { %1113 = vmatpush3.bf16.msra.mxu0 %v1232_v57 }
 0x1a1   : > { %1114 = vmatprep.subr.bf16.mxu0 %v1394_v55 }
 0x1a4   : > { %1115 = vmatpush3.bf16.msra.mxu0 %v1233_v58 }
 0x1a5   : > { %1116 = vmatprep.subr.bf16.mxu0 %v1394_v55 }
 0x1a8   : > { %1117 = vmatpush3.bf16.msra.mxu0 %v1234_v59 }
 0x1a9   : > { %1118 = vmatprep.subr.bf16.mxu0 %v1394_v55 }
 0x1ac   : > { %1119 = vmatpush3.bf16.msra.mxu0 %v1235_v60 }
 0x1ad   : > { %1120 = vmatprep.subr.bf16.mxu0 %v1394_v55 }
 0x1b0   : > { %1121 = vmatpush3.bf16.msra.mxu0 %v1236_v61 }
 0x1b1   : > { %1122 = vmatprep.subr.bf16.mxu0 %v1394_v55 }
 0x1b4   : > { %1123 = vmatpush3.bf16.msra.mxu0 %v1237_v62 }
 0x1b7   : > { %1125 = vmatmul.mubr.bf16.vlgmr.msra.gmra.mrb[0].mxu0 %v727_v63 }
 0x28a   : > { %v826_v0 = vpop.f32.mrb[0].mxu0 }
 0x28b   : > { %v834_v1 = vrot.slane %v826_v0, 4  ;;  %v1126_v2 = vpop.f32.mrb[1].mxu0 }
 0x28c   : > { %v829_v3 = vpop.f32.mrb[2].mxu0 }
 0x28d   : > { %v835_v4 = vadd.f32 %v834_v1, %v826_v0  ;;  %v1127_v5 = vpop.f32.mrb[3].mxu0 }
 0x28f   : > { %v836_v6 = vrot.slane %v835_v4, 2 }
 0x291   : > { %v837_v7 = vadd.f32 %v836_v6, %v835_v4 }
 0x293   : > { %v838_v8 = vrot.slane %v837_v7, 1 }
 0x295   : > { %v839_v9 = vadd.f32 %v838_v8, %v837_v7 }
 0x297   : > { %v840_v10 = vmul.f32 0.125, %v839_v9 }
 0x299   : > { %v841_v11 = vsub.f32 %v826_v0, %v840_v10 }
 0x29b   : > { %v842_v12 = vmul.f32 %v841_v11, %v841_v11 }
 0x29d   : > { %v843_v13 = vrot.slane %v842_v12, 4 }
 0x29f   : > { %v844_v14 = vadd.f32 %v843_v13, %v842_v12 }
 0x2a1   : > { %v845_v15 = vrot.slane %v844_v14, 2 }
 0x2a3   : > { %v846_v16 = vadd.f32 %v845_v15, %v844_v14 }
 0x2a5   : > { %v847_v17 = vrot.slane %v846_v16, 1 }
 0x2a7   : > { %v848_v18 = vadd.f32 %v847_v17, %v846_v16 }
 0x2a9   : > { %v849_v19 = vmul.f32 0.125, %v848_v18 }
 0x2ab   : > { %v850_v20 = vadd.f32 1e-05, %v849_v19 }
 0x2ad   : > { %1238 = vrsqrt.f32 %v850_v20 }
 0x2b7   : > { %v1239_v25 = vpop.eup %1238 }
 0x2b8   : > { %v852_v26 = vmul.f32 %v1239_v25, %v832_v23 }
 0x2ba   : > { %v856_v28 = vrot.slane %v852_v26, %v855_v24 }
 0x2bc   : > { %v857_v30 = vmul.f32 %v856_v28, %v841_v11 }
 0x2be   : > { %v864_v32 = vadd.f32 %v1094_v29, %v857_v30 }
 0x2c0   : > { %v871_v33 = vadd.f32 %v870_v31, %v864_v32 }
 0x2c2   : > { %v872_v34 = vmax.f32 %v871_v33, 0.0 }
 0x2c4   : > { %873 = vst [vmem:[#allocation10] sm:$0xff] %v872_v34 }
 0x2c5 PF: > { %p1166_p1 = scmp.eq.s32.totalorder %s1492_s30, 1  ;;  %s1396_s18 = smov [#allocation10]  }
 0x2c6   : > { %s889_s26 = sshll.u32 %s1396_s18, 4  ;;  %s890_s26 = int_to_ptr.vmem [resolvable:$true] %s889_s26 }
 0x2c7   : > { %s1324_s15 = scalar_lea.vmem %s890_s26, 128  ;;  %s1330_s16 = scalar_lea.vmem %s890_s26, 256 }
 0x2c8   : > { %p1325_p2 = scmp.ne.s32.totalorder %s890_s26, %s1324_s15  ;;  %p1331_p6 = scmp.lt.s32.totalorder %s890_s26, %s890_s26 }
 0x2c9   : > { %p1332_p9 = scmp.lt.s32.totalorder %s1330_s16, %s1324_s15 }
 0x2ca   : > { %p1326_p4 = pnand %p1325_p2, %p1166_p1 }
 0x2cb   : > { %p1333_p11 = por %p1332_p9, %p1331_p6 }
 0x2cc   : > { %p1327_p0 = pneg %p1326_p4 }
 0x2ce   : > { %p1334_p13 = pnand %p1333_p11, %p1327_p0 }
 0x2d0   : > { %1337 = shalt.err (!%p1334_p13)
}
 0x2d1   : > { %s1338_s21 = scalar_lea.hbm %s1625_s8, 128 }
 0x2d2   : > { %p1339_p5 = scmp.ne.s32.totalorder %s1625_s8, %s1338_s21  ;;  %p1344_p8 = scmp.lt.u32.totalorder %s1338_s21, %s1625_s8 }
 0x2d4   : > { %p1340_p7 = pnand %p1339_p5, %p1166_p1 }
 0x2d6   : > { %p1341_p3 = pneg %p1340_p7 }
 0x2d8   : > { %p1346_p12 = pnand %p1344_p8, %p1341_p3 }
 0x2da   : > { %1349 = shalt.err (!%p1346_p12)
}
 0x2db   : > { %1141 = dma.vmem_to_hbm [thread:$0]  (%p1166_p1), %s890_s26, 128, %s1625_s8, [#allocation6]  }
 0x2dc PF: > { %p1168_p10 = scmp.eq.s32.totalorder %s1051_s10, 1  ;;  %p1642_p2 = scmp.ge.s32.totalorder %s1384_s29, 2 }
 0x2de   : > { %p1156_p4 = pnand %p1168_p10, %p1642_p2 }
 0x2e0   : > { %1371 = dma.done.wait (!%p1156_p4), [#allocation6], 128  }
 0x2e1   : > { %1373 = vsyncadd (!%p1156_p4), [#allocation6], 4294967168  ;;  %s25_s29 = sadd.s32 1, %s1384_s29   ;;  %s1643_s27 = smov %s1380_s28 }
 0x2e2   : > { %p22_p0 = scmp.ge.s32.totalorder %s25_s29, 4   ;;  %s1644_s28 = smov %s1646_s11 }
 0x2e4   :  { %24 = sbr.rel (!%p22_p0) target bundleno = 6 (0x6), region = 139 }
 0x2eb   :  { %907 = vsyncpa [#allocation5], 1 }
 0x2ec   :  { %909 = vsyncpa [#allocation5 + $0x1], 1 }
 0x2ed   :  { %910 = vsyncpa [#allocation8], 1 }
 0x2ee   :  { %912 = vsyncpa [#allocation8 + $0x1], 1 }
 0x2ef   :  { %913 = vsyncpa [#allocation6], 1 }
 0x2f0   :  { %915 = vsyncpa [#allocation6 + $0x1], 1 }

</bundles_post_ra>
